<compile_context>
chip_gen: v7x
topology: tpu7x:2x2x1
jax: 0.10.0
libtpu: 0.0.40
codegen_flags: <defaults>
</compile_context>

<pallas_src>
import jax
import jax.numpy as jnp
from jax.experimental import pallas as pl
from jax.experimental.pallas import tpu as pltpu


# -----------------------------------------------------------------------------
# Fused kernel (one grid step == TB batch elements):
#   x_ref     : (1, TB*HW, 9*Cin) bf16  im2col slab for this batch tile
#   wc_ref    : (9*Cin, Ch)       bf16  conv weight, tap-major rows
#   bc_ref    : (1, Ch)           f32   conv bias
#   wfc_ref   : (Ch, NC)          f32   fc weight (transposed)
#   bfc_ref   : (1, NC)           f32   fc bias
#   pw_ref    : (TB, TB*HW)       f32   block-diagonal pooling matrix (1/(H*W))
#   feat_ref  : (1, TB, Ch)       f32   backbone features for this tile
#   score_ref : (1, TB, NC)       f32   fc scores for this tile
# -----------------------------------------------------------------------------
def _fused_conv_gap_fc_kernel(x_ref, wc_ref, bc_ref, wfc_ref, bfc_ref, pw_ref,
                              feat_ref, score_ref):
    # Conv as a single K=36 MXU matmul over the whole batch-tile (f32 accumulate).
    acc = jnp.dot(x_ref[0], wc_ref[...],
                  preferred_element_type=jnp.float32)            # (M, Ch)
    # Bias + ReLU in f32 on the VPU.
    acc = jnp.maximum(acc + bc_ref[...], 0.0)
    # Global average pool as a block-diagonal matmul: (TB, M) x (M, Ch) -> (TB, Ch).
    feat = jnp.dot(pw_ref[...], acc, preferred_element_type=jnp.float32)
    feat_ref[0] = feat
    # Tiny fc head, f32 end to end.
    score = jnp.dot(feat, wfc_ref[...],
                    preferred_element_type=jnp.float32) + bfc_ref[...]
    score_ref[0] = score


@jax.jit
def model_forward(x_nchw, conv_w, conv_b, fc_w, fc_b):
    B, Cin, H, W = x_nchw.shape
    Ch = conv_w.shape[0]          # conv_w: [Ch, Cin, 3, 3]
    NC = fc_w.shape[0]            # fc_w:   [NC, Ch]
    HW = H * W
    K = 9 * Cin

    # ---- batch-tile size: a few thousand conv rows per step, >= 2 steps if B >= 2 ----
    tb = max(1, min(B, 4096 // max(HW, 1)))
    if B >= 2:
        tb = min(tb, max(1, B // 2))      # keep both v7x TensorCores busy
    G = pl.cdiv(B, tb)
    Bp = G * tb

    # ---- cheap XLA glue: NCHW -> padded NHWC -> im2col [G, TB*HW, 9*Cin] bf16 ----
    x = jnp.transpose(x_nchw, (0, 2, 3, 1))                       # [B, H, W, Cin]
    xp = jnp.pad(x, ((0, 0), (1, 1), (1, 1), (0, 0)))             # [B, Hp, Wp, Cin]
    patches = jnp.stack([xp[:, di:di + H, dj:dj + W, :]
                         for di in range(3) for dj in range(3)],
                        axis=3)                                   # [B, H, W, 9, Cin]
    cols = patches.reshape(B, HW, K)
    if Bp > B:
        cols = jnp.pad(cols, ((0, Bp - B), (0, 0), (0, 0)))
    cols = cols.reshape(G, tb * HW, K).astype(jnp.bfloat16)       # bf16 once, in wrapper

    # conv weight [Ch,Cin,3,3] -> [9*Cin, Ch] (tap-major, matching im2col), bf16
    wc = jnp.transpose(conv_w, (2, 3, 1, 0)).reshape(K, Ch).astype(jnp.bfloat16)
    bc = conv_b.reshape(1, Ch).astype(jnp.float32)
    wfc = jnp.transpose(fc_w).astype(jnp.float32)                 # [Ch, NC]
    bfc = fc_b.reshape(1, NC).astype(jnp.float32)

    # block-diagonal pooling matrix: pw[i, j] = 1/(H*W) iff row j belongs to image i
    row = jnp.arange(tb, dtype=jnp.int32)[:, None]
    col = jnp.arange(tb * HW, dtype=jnp.int32)[None, :]
    pw = jnp.where((col // HW) == row, 1.0 / HW, 0.0).astype(jnp.float32)

    feat3, score3 = pl.pallas_call(
        _fused_conv_gap_fc_kernel,
        grid=(G,),
        in_specs=[
            pl.BlockSpec((1, tb * HW, K), lambda g: (g, 0, 0)),   # per-tile im2col slab
            pl.BlockSpec((K, Ch), lambda g: (0, 0)),              # resident weights
            pl.BlockSpec((1, Ch), lambda g: (0, 0)),
            pl.BlockSpec((Ch, NC), lambda g: (0, 0)),
            pl.BlockSpec((1, NC), lambda g: (0, 0)),
            pl.BlockSpec((tb, tb * HW), lambda g: (0, 0)),
        ],
        out_specs=(
            pl.BlockSpec((1, tb, Ch), lambda g: (g, 0, 0)),
            pl.BlockSpec((1, tb, NC), lambda g: (g, 0, 0)),
        ),
        out_shape=(
            jax.ShapeDtypeStruct((G, tb, Ch), jnp.float32),
            jax.ShapeDtypeStruct((G, tb, NC), jnp.float32),
        ),
        compiler_params=pltpu.CompilerParams(
            dimension_semantics=("parallel",),   # batch-tile axis across TCs (v7x)
        ),
    )(cols, wc, bc, wfc, bfc, pw)

    feat = feat3.reshape(Bp, Ch)[:B]
    score = score3.reshape(Bp, NC)[:B]
    # forward(x): score, x = self.model(x); return (score, x)
    return score, feat


def init_params(key, cin=4, ch=32, num_classes=9):
    k1, k2, k3 = jax.random.split(key, 3)
    fan_in = cin * 3 * 3
    # kaiming_normal_ for conv weight, bias constant 0
    conv_w = jax.random.normal(k1, (ch, cin, 3, 3), jnp.float32) * jnp.sqrt(2.0 / fan_in)
    conv_b = jnp.zeros((ch,), jnp.float32)
    # orthogonal_ for the 'fc' weight (orthonormal rows, with QR sign correction)
    a = jax.random.normal(k2, (ch, num_classes), jnp.float32)
    q, r = jnp.linalg.qr(a)
    q = q * jnp.sign(jnp.diagonal(r))            # match torch.nn.init.orthogonal_
    fc_w = jnp.transpose(q)                      # [num_classes, ch]
    # fc bias: PyTorch Linear default U(-1/sqrt(ch), 1/sqrt(ch))
    bound = 1.0 / jnp.sqrt(jnp.float32(ch))
    fc_b = jax.random.uniform(k3, (num_classes,), jnp.float32, -bound, bound)
    return conv_w, conv_b, fc_w, fc_b


if __name__ == "__main__":
    key = jax.random.PRNGKey(0)
    kx, kp = jax.random.split(key)

    B, Cin, H, W = 2, 4, 16, 16
    x = jax.random.normal(kx, (B, Cin, H, W), jnp.float32)

    conv_w, conv_b, fc_w, fc_b = init_params(kp, cin=Cin, ch=32, num_classes=9)

    score, feat = model_forward(x, conv_w, conv_b, fc_w, fc_b)
    jax.block_until_ready((score, feat))

    assert score.shape == (B, 9) and feat.shape == (B, 32)
    assert bool(jnp.all(jnp.isfinite(score))) and bool(jnp.all(jnp.isfinite(feat)))
    print("KERNEL_OK")
</pallas_src>

<mosaic_0001>
module attributes {stable_mosaic.version = 11 : i64} {
  func.func @_fused_conv_gap_fc_kernel(%arg0: i32, %arg1: memref<1x256x36xbf16, #tpu.memory_space<vmem>>, %arg2: memref<36x32xbf16, #tpu.memory_space<vmem>>, %arg3: memref<1x32xf32, #tpu.memory_space<vmem>>, %arg4: memref<32x9xf32, #tpu.memory_space<vmem>>, %arg5: memref<1x9xf32, #tpu.memory_space<vmem>>, %arg6: memref<1x256xf32, #tpu.memory_space<vmem>>, %arg7: memref<1x1x32xf32, #tpu.memory_space<vmem>>, %arg8: memref<1x1x9xf32, #tpu.memory_space<vmem>>) attributes {dimension_semantics = [#tpu.dimension_semantics<parallel>], iteration_bounds = array<i64: 2>, scalar_prefetch = 0 : i64, scratch_operands = 0 : i64, tpu.core_type = #tpu.core_type<tc>, window_params = [{transform_indices = @transform_0, window_bounds = array<i64: 1, 256, 36>}, {pipeline_mode = #tpu.pipeline_mode<synchronous>, transform_indices = @transform_1, window_bounds = array<i64: 36, 32>}, {pipeline_mode = #tpu.pipeline_mode<synchronous>, transform_indices = @transform_2, window_bounds = array<i64: 1, 32>}, {pipeline_mode = #tpu.pipeline_mode<synchronous>, transform_indices = @transform_3, window_bounds = array<i64: 32, 9>}, {pipeline_mode = #tpu.pipeline_mode<synchronous>, transform_indices = @transform_4, window_bounds = array<i64: 1, 9>}, {pipeline_mode = #tpu.pipeline_mode<synchronous>, transform_indices = @transform_5, window_bounds = array<i64: 1, 256>}, {transform_indices = @transform_6, window_bounds = array<i64: 1, 1, 32>}, {transform_indices = @transform_7, window_bounds = array<i64: 1, 1, 9>}]} {
    %c0 = arith.constant 0 : index
    %c0_0 = arith.constant 0 : index
    %c0_1 = arith.constant 0 : index
    %0 = vector.load %arg1[%c0, %c0_0, %c0_1] : memref<1x256x36xbf16, #tpu.memory_space<vmem>>, vector<1x256x36xbf16>
    %1 = vector.shape_cast %0 : vector<1x256x36xbf16> to vector<256x36xbf16>
    %c0_2 = arith.constant 0 : index
    %c0_3 = arith.constant 0 : index
    %2 = vector.load %arg2[%c0_2, %c0_3] : memref<36x32xbf16, #tpu.memory_space<vmem>>, vector<36x32xbf16>
    %cst = arith.constant dense<0.000000e+00> : vector<256x32xf32>
    %3 = tpu.matmul %1, %2, %cst {dimension_numbers = #tpu.dot_dimension_numbers<[1], [0], [0], [1], [0, 0, 1, 1], [], []>} : vector<256x36xbf16>, vector<36x32xbf16>, vector<256x32xf32> -> vector<256x32xf32>
    %c0_4 = arith.constant 0 : index
    %c0_5 = arith.constant 0 : index
    %4 = vector.load %arg3[%c0_4, %c0_5] : memref<1x32xf32, #tpu.memory_space<vmem>>, vector<1x32xf32>
    %5 = vector.broadcast %4 : vector<1x32xf32> to vector<256x32xf32>
    %6 = arith.addf %3, %5 : vector<256x32xf32>
    %cst_6 = arith.constant 0.000000e+00 : f32
    %7 = vector.broadcast %cst_6 : f32 to vector<256x32xf32>
    %8 = arith.maximumf %6, %7 : vector<256x32xf32>
    %c0_7 = arith.constant 0 : index
    %c0_8 = arith.constant 0 : index
    %9 = vector.load %arg6[%c0_7, %c0_8] : memref<1x256xf32, #tpu.memory_space<vmem>>, vector<1x256xf32>
    %cst_9 = arith.constant dense<0.000000e+00> : vector<1x32xf32>
    %10 = tpu.matmul %9, %8, %cst_9 {dimension_numbers = #tpu.dot_dimension_numbers<[1], [0], [0], [1], [0, 0, 1, 1], [], []>} : vector<1x256xf32>, vector<256x32xf32>, vector<1x32xf32> -> vector<1x32xf32>
    %c0_10 = arith.constant 0 : index
    %c0_11 = arith.constant 0 : index
    %c0_12 = arith.constant 0 : index
    %11 = vector.load %arg7[%c0_10, %c0_11, %c0_12] : memref<1x1x32xf32, #tpu.memory_space<vmem>>, vector<1x1x32xf32>
    %12 = vector.shape_cast %11 : vector<1x1x32xf32> to vector<1x32xf32>
    %13 = vector.shape_cast %10 : vector<1x32xf32> to vector<1x1x32xf32>
    tpu.vector_store %arg7[%c0_10, %c0_11, %c0_12], %13 {strides = array<i32>} : memref<1x1x32xf32, #tpu.memory_space<vmem>>, vector<1x1x32xf32>,
    %c0_13 = arith.constant 0 : index
    %c0_14 = arith.constant 0 : index
    %14 = vector.load %arg4[%c0_13, %c0_14] : memref<32x9xf32, #tpu.memory_space<vmem>>, vector<32x9xf32>
    %cst_15 = arith.constant dense<0.000000e+00> : vector<1x9xf32>
    %15 = tpu.matmul %10, %14, %cst_15 {dimension_numbers = #tpu.dot_dimension_numbers<[1], [0], [0], [1], [0, 0, 1, 1], [], []>} : vector<1x32xf32>, vector<32x9xf32>, vector<1x9xf32> -> vector<1x9xf32>
    %c0_16 = arith.constant 0 : index
    %c0_17 = arith.constant 0 : index
    %16 = vector.load %arg5[%c0_16, %c0_17] : memref<1x9xf32, #tpu.memory_space<vmem>>, vector<1x9xf32>
    %17 = arith.addf %15, %16 : vector<1x9xf32>
    %c0_18 = arith.constant 0 : index
    %c0_19 = arith.constant 0 : index
    %c0_20 = arith.constant 0 : index
    %18 = vector.load %arg8[%c0_18, %c0_19, %c0_20] : memref<1x1x9xf32, #tpu.memory_space<vmem>>, vector<1x1x9xf32>
    %19 = vector.shape_cast %18 : vector<1x1x9xf32> to vector<1x9xf32>
    %20 = vector.shape_cast %17 : vector<1x9xf32> to vector<1x1x9xf32>
    tpu.vector_store %arg8[%c0_18, %c0_19, %c0_20], %20 {strides = array<i32>} : memref<1x1x9xf32, #tpu.memory_space<vmem>>, vector<1x1x9xf32>,
    return
  }
  func.func @transform_0(%arg0: i32) -> (i32, i32, i32) {
    %c0_i32 = arith.constant 0 : i32
    %c0_i32_0 = arith.constant 0 : i32
    %c0_i32_1 = arith.constant 0 : i32
    return %arg0, %c0_i32, %c0_i32_0 : i32, i32, i32
  }
  func.func @transform_1(%arg0: i32) -> (i32, i32) {
    %c0_i32 = arith.constant 0 : i32
    %c0_i32_0 = arith.constant 0 : i32
    %c0_i32_1 = arith.constant 0 : i32
    return %c0_i32, %c0_i32_0 : i32, i32
  }
  func.func @transform_2(%arg0: i32) -> (i32, i32) {
    %c0_i32 = arith.constant 0 : i32
    %c0_i32_0 = arith.constant 0 : i32
    %c0_i32_1 = arith.constant 0 : i32
    return %c0_i32, %c0_i32_0 : i32, i32
  }
  func.func @transform_3(%arg0: i32) -> (i32, i32) {
    %c0_i32 = arith.constant 0 : i32
    %c0_i32_0 = arith.constant 0 : i32
    %c0_i32_1 = arith.constant 0 : i32
    return %c0_i32, %c0_i32_0 : i32, i32
  }
  func.func @transform_4(%arg0: i32) -> (i32, i32) {
    %c0_i32 = arith.constant 0 : i32
    %c0_i32_0 = arith.constant 0 : i32
    %c0_i32_1 = arith.constant 0 : i32
    return %c0_i32, %c0_i32_0 : i32, i32
  }
  func.func @transform_5(%arg0: i32) -> (i32, i32) {
    %c0_i32 = arith.constant 0 : i32
    %c0_i32_0 = arith.constant 0 : i32
    %c0_i32_1 = arith.constant 0 : i32
    return %c0_i32, %c0_i32_0 : i32, i32
  }
  func.func @transform_6(%arg0: i32) -> (i32, i32, i32) {
    %c0_i32 = arith.constant 0 : i32
    %c0_i32_0 = arith.constant 0 : i32
    %c0_i32_1 = arith.constant 0 : i32
    return %arg0, %c0_i32, %c0_i32_0 : i32, i32, i32
  }
  func.func @transform_7(%arg0: i32) -> (i32, i32, i32) {
    %c0_i32 = arith.constant 0 : i32
    %c0_i32_0 = arith.constant 0 : i32
    %c0_i32_1 = arith.constant 0 : i32
    return %arg0, %c0_i32, %c0_i32_0 : i32, i32, i32
  }
}

</mosaic_0001>

<bundles_post_ra>
// kernel: model_forward.1
= control target key start
LH: loop header
LB: loop body
LE: loop exit
PB: predicated region body
PF: predicated region fallthrough
CT: control target
= control target key end

     0   :  { %13 = vsyncpa [#allocation3], 0  ;;  %s1609_s0 = inlined_call_operand.vmem [shape: bf16[2,256,36], index: 0, kind: input, shape index: {}]   ;;  %s1610_s1 = inlined_call_operand.vmem [shape: bf16[36,32], index: 1, kind: input, shape index: {}]   ;;  %s1611_s2 = inlined_call_operand.vmem [shape: f32[1,32], index: 2, kind: input, shape index: {}]   ;;  %s1612_s3 = inlined_call_operand.vmem [shape: f32[32,9], index: 3, kind: input, shape index: {}]   ;;  %s1613_s4 = inlined_call_operand.vmem [shape: f32[1,9], index: 4, kind: input, shape index: {}]   ;;  %s1614_s5 = inlined_call_operand.vmem [shape: f32[1,256], index: 5, kind: input, shape index: {}]   ;;  %s1615_s6 = inlined_call_operand.hbm [shape: f32[2,1,32], index: 6, kind: output, shape index: {0}]   ;;  %s1616_s7 = inlined_call_operand.hbm [shape: f32[2,1,9], index: 7, kind: output, shape index: {1}]  }
   0x1   :  { %15 = vsyncpa [#allocation3 + $0x1], 0 }
   0x2   :  { %16 = vsyncpa [#allocation5], 0 }
   0x3   :  { %18 = vsyncpa [#allocation5 + $0x1], 0  ;;  %s1352_s24 = smov 0   ;;  %s1354_s25 = smov 0  }
   0x4   :  { %s1356_s26 = smov 0   ;;  %s1358_s27 = smov 0  }
   0x5 LB: > { %s1373_s28 = sadd.s32 4294967295, %s1305_s27   ;;  %s950_s29 = sadd.s32 4294967294, %s1305_s27   ;;  %s1305_s27 = sphi %s1358_s27, %s1622_s27   ;;  %s1301_s26 = sphi %s1356_s26, %s1621_s26   ;;  %s1297_s25 = sphi %s1354_s25, %s1620_s25   ;;  %s1293_s24 = sphi %s1352_s24, %s1619_s24  }
   0x6   : > { %s1377_s30 = sadd.s32 1, %s1305_s27   ;;  %s162_s8 = sadd.s32 1, %s1301_s26 }
   0x7   : > { %s159_s9 = ssub.s32 %s1305_s27, %s1377_s30  ;;  %p172_p0 = scmp.ne.s32.totalorder %s1301_s26, %s1297_s25 }
   0x8   : > { %p160_p1 = scmp.eq.s32.totalorder %s159_s9, 0  ;;  %p173_p2 = scmp.eq.s32.totalorder %s1373_s28, 1 }
   0x9   : > { %p178_p3 = scmp.ne.s32.totalorder %s1297_s25, %s1293_s24  ;;  %p179_p4 = scmp.eq.s32.totalorder %s950_s29, 1 }
   0xa   : > { %s1388_s10 = scalar_select %p160_p1, %s1301_s26, %s162_s8  }
   0xb   : > { %p1390_p5 = por %p173_p2, %p172_p0  ;;  %p1394_p6 = por %p179_p4, %p178_p3 }
   0xc   : > { %p953_p7 = scmp.ge.s32.totalorder %s1305_s27, 1  ;;  %p246_p8 = scmp.lt.s32.totalorder %s1305_s27, 3 }
   0xe   : > { %p247_p9 = pnand %p953_p7, %p246_p8 }
   0xf   : > { %v1192_v0 = vld [vmem:[%s1610_s1] sm:$0xff] (!%p247_p9)   ;;  %v1193_v1 = vld [vmem:[%s1610_s1 + $0x8] sm:$0xff] (!%p247_p9)   ;;  %p281_p10 = scmp.lt.s32.totalorder (!%p247_p9), %s1373_s28, 1  ;;  %v1194_v2 = vld [vmem:[%s1610_s1 + $0x10] ss:$0 sps:$4 sm:$0x33] (!%p247_p9)   ;;  %v674_v20 = vlaneseq (!%p247_p9) }
  0x10   : > { %250 = sbr.rel (%p247_p9) target bundleno = 757 (0x2f5), region = 44  ;;  %1057 = vmatprep.subr.bf16.mxu0 (!%p247_p9), %v1192_v0  ;;  %vm475_vm0 = vcmask (!%p247_p9), 1041408   ;;  %vm426_vm1 = vcmask (!%p247_p9), 293888   ;;  %v672_v23 = vld [vmem:[%s1614_s5] sm:$0x3] (!%p247_p9)  ;;  %vm1308_vm2 = vmmov (!%p247_p9), 0  }
  0x11   : > { %1058 = vmatpush3.bf16.msra.mxu0 (!%p247_p9), %v1192_v0  ;;  %v477_v4 = vsel (!%p247_p9), %vm475_vm0, %v1194_v2, 0  ;;  %v675_v21 = vshrl.u32 (!%p247_p9), %v674_v20, 7  ;;  %v1456_v27 = vld [vmem:[%s1611_s2] ss:$0 sm:$0xff] (!%p247_p9)  ;;  %s1528_s22 = sand.u32 (!%p247_p9), 1, %s1297_s25   ;;  %vm761_vm3 = vcmask (!%p247_p9), 261120  }
  0x12   : > { %1059 = vmatprep.subr.bf16.mxu0 (!%p247_p9), %v1193_v1  ;;  %vm754_vm4 = vcmask (!%p247_p9), 253952   ;;  %s993_s29 = sshll.u32 (!%p247_p9), %s1373_s28, 4  ;;  %s838_s15 = scalar_lea.sflag (!%p247_p9), [#allocation3], %s1528_s22 }
  0x13   : > { %v680_v22 = vsub.s32 (!%p247_p9), 1, %v675_v21  ;;  %v676_v24 = vsub.s32 (!%p247_p9), 0, %v675_v21  ;;  %s1537_s13 = scalar_lea.hbm (!%p247_p9), %s1615_s6, %s993_s29 }
  0x15   : > { %1060 = vmatpush3.bf16.msra.mxu0 (!%p247_p9), %v1193_v1  ;;  %v681_v25 = vrot.slane (!%p247_p9), %v672_v23, %v680_v22  ;;  %v1451_v26 = vrot.slane (!%p247_p9), %v672_v23, %v676_v24 }
  0x16   : > { %1144 = vmatprep.subr.msk.bf16.mxu0 (!%p247_p9), %vm475_vm0, %v1194_v2 }
  0x17   : > { %s282_s17 = scalar_select %p281_p10, %s1373_s28, 1  ;;  %748 = vmatprep.mubr.f32.mxu1 %v681_v25 }
  0x19   : > { %s997_s20 = sshll.u32 %s282_s17, 7  ;;  %1062 = vmatpush3.bf16.msra.mxu0 %v477_v4  ;;  %s1310_s17 = smov [#allocation2]  }
  0x1a   : > { %s1414_s23 = scalar_lea.vmem %s1609_s0, %s997_s20  ;;  %s1215_s18 = sshll.u32 %s1310_s17, 4  ;;  %s1216_s18 = int_to_ptr.vmem [resolvable:$false] %s1215_s18 }
  0x1b   : > { %v1195_v3 = vld [vmem:[%s1414_s23] sm:$0xff]   ;;  %v1196_v5 = vld [vmem:[%s1414_s23 + $0x8] sm:$0xff]   ;;  %v1197_v6 = vld [vmem:[%s1414_s23 + $0x10] sm:$0xff]   ;;  %s1217_s19 = scalar_lea.vmem %s1216_s18, 32 }
  0x1c   : > { %1063 = vmatprep.mubr.msk.bf16.mxu0 %vm426_vm1, %v1195_v3  ;;  %v1198_v7 = vld [vmem:[%s1414_s23 + $0x18] sm:$0xff]   ;;  %v1199_v8 = vld [vmem:[%s1414_s23 + $0x20] sm:$0xff]   ;;  %v1200_v9 = vld [vmem:[%s1414_s23 + $0x28] sm:$0xff]  }
  0x1d   : > { %1064 = vmatmul.mubr.msk.bf16.vlgmr.msra.gmra.mrb[0].mxu0 %vm426_vm1, %v1196_v5  ;;  %v1201_v10 = vld [vmem:[%s1414_s23 + $0x30] sm:$0xff]   ;;  %v1202_v11 = vld [vmem:[%s1414_s23 + $0x38] sm:$0xff]   ;;  %v1203_v12 = vld [vmem:[%s1414_s23 + $0x40] sm:$0xff]  }
  0x1e   : > { %1067 = vmatprep.mubr.msk.bf16.mxu0 %vm426_vm1, %v1197_v6  ;;  %v1204_v13 = vld [vmem:[%s1414_s23 + $0x48] sm:$0xff]   ;;  %v1205_v14 = vld [vmem:[%s1414_s23 + $0x50] sm:$0xff]   ;;  %v1206_v15 = vld [vmem:[%s1414_s23 + $0x58] sm:$0xff]  }
  0x1f   : > { %v1207_v16 = vld [vmem:[%s1414_s23 + $0x60] sm:$0xff]   ;;  %v1208_v17 = vld [vmem:[%s1414_s23 + $0x68] sm:$0xff]   ;;  %v1209_v18 = vld [vmem:[%s1414_s23 + $0x70] sm:$0xff]  }
  0x20   : > { %v1210_v19 = vld [vmem:[%s1414_s23 + $0x78] sm:$0xff]   ;;  %s274_s23 = scalar_lea.vmem [#allocation2], %s1528_s22 }
  0x21   : > { %s854_s14 = sshll.u32 %s274_s23, 4  ;;  %s855_s14 = int_to_ptr.vmem [resolvable:$true] %s854_s14 }
  0x22   : > { %s1211_s16 = scalar_lea.vmem %s855_s14, 16  ;;  %p1218_p0 = scmp.lt.s32.totalorder %s855_s14, %s1216_s18 }
  0x23   : > { %p1212_p11 = scmp.ne.s32.totalorder %s855_s14, %s1211_s16  ;;  %p1219_p1 = scmp.lt.s32.totalorder %s1217_s19, %s1211_s16 }
  0x25   : > { %1068 = vmatmul.mubr.msk.bf16.gmra.mrb[4].mxu0 %vm426_vm1, %v1198_v7  ;;  %p1213_p12 = pnand %p1212_p11, %p1390_p5  ;;  %p1220_p2 = por %p1219_p1, %p1218_p0 }
  0x26   : > { %1071 = vmatprep.mubr.msk.bf16.mxu0 %vm426_vm1, %v1199_v8 }
  0x27   : > { %p1214_p13 = pneg %p1213_p12 }
  0x29   : > { %p1221_p3 = pnand %p1220_p2, %p1214_p13 }
  0x2d   : > { %1072 = vmatmul.mubr.msk.bf16.gmra.mrb[8].mxu0 %vm426_vm1, %v1200_v9 }
  0x2e   : > { %1075 = vmatprep.mubr.msk.bf16.mxu0 %vm426_vm1, %v1201_v10 }
  0x35   : > { %1076 = vmatmul.mubr.msk.bf16.gmra.mrb[12].mxu0 %vm426_vm1, %v1202_v11 }
  0x36   : > { %1079 = vmatprep.mubr.msk.bf16.mxu0 %vm426_vm1, %v1203_v12 }
  0x3d   : > { %1080 = vmatmul.mubr.msk.bf16.gmra.mrb[16].mxu0 %vm426_vm1, %v1204_v13 }
  0x3e   : > { %1083 = vmatprep.mubr.msk.bf16.mxu0 %vm426_vm1, %v1205_v14 }
  0x45   : > { %1084 = vmatmul.mubr.msk.bf16.gmra.mrb[20].mxu0 %vm426_vm1, %v1206_v15 }
  0x46   : > { %1087 = vmatprep.mubr.msk.bf16.mxu0 %vm426_vm1, %v1207_v16 }
  0x4d   : > { %1088 = vmatmul.mubr.msk.bf16.gmra.mrb[24].mxu0 %vm426_vm1, %v1208_v17 }
  0x4e   : > { %1091 = vmatprep.mubr.msk.bf16.mxu0 %vm426_vm1, %v1209_v18 }
  0x55   : > { %1092 = vmatmul.mubr.msk.bf16.gmra.mrb[28].mxu0 %vm426_vm1, %v1210_v19 }
  0xf0   : > { %v1065_v28 = vpop.f32.mrb[0].mxu0 }
  0xf1   : > { %v522_v29 = vadd.f32 %v1065_v28, %v1456_v27  ;;  %v513_v30 = vpop.f32.mrb[1].mxu0 }
  0xf2   : > { %v514_v31 = vadd.f32 %v1456_v27, %v513_v30  ;;  %v1066_v32 = vpop.f32.mrb[2].mxu0 }
  0xf3   : > { %v525_v33 = vadd.f32 %v1066_v32, %v1456_v27  ;;  %v516_v34 = vpop.f32.mrb[3].mxu0  ;;  %v642_v36 = vmax.f32 %v522_v29, 0.0 }
  0xf4   : > { %v517_v35 = vadd.f32 %v1456_v27, %v516_v34  ;;  %v640_v38 = vmax.f32 %v514_v31, 0.0 }
  0xf5   : > { %v643_v37 = vmax.f32 %v525_v33, 0.0 }
  0xf6   : > { %v641_v39 = vmax.f32 %v517_v35, 0.0 }
  0xf7   : > { %v1462_v40 = vpack.c.bf16 %v643_v37, %v642_v36 }
  0xf8   : > { %v1069_v41 = vpop.f32.mrb[4].mxu0  ;;  %v1464_v42 = vpack.c.bf16 %v641_v39, %v640_v38 }
  0xf9   : > { %v538_v43 = vadd.f32 %v1069_v41, %v1456_v27  ;;  %v529_v44 = vpop.f32.mrb[5].mxu0 }
  0xfa   : > { %v530_v45 = vadd.f32 %v1456_v27, %v529_v44  ;;  %v1070_v46 = vpop.f32.mrb[6].mxu0 }
  0xfb   : > { %v541_v47 = vadd.f32 %v1070_v46, %v1456_v27  ;;  %v532_v48 = vpop.f32.mrb[7].mxu0  ;;  %v646_v50 = vmax.f32 %v538_v43, 0.0 }
  0xfc   : > { %v533_v49 = vadd.f32 %v1456_v27, %v532_v48  ;;  %v644_v52 = vmax.f32 %v530_v45, 0.0 }
  0xfd   : > { %v647_v51 = vmax.f32 %v541_v47, 0.0 }
  0xfe   : > { %v645_v53 = vmax.f32 %v533_v49, 0.0 }
  0xff   : > { %v1470_v54 = vpack.c.bf16 %v647_v51, %v646_v50 }
 0x100   : > { %v1472_v55 = vpack.c.bf16 %v645_v53, %v644_v52  ;;  %v1073_v56 = vpop.f32.mrb[8].mxu0 }
 0x101   : > { %v554_v57 = vadd.f32 %v1073_v56, %v1456_v27  ;;  %v545_v58 = vpop.f32.mrb[9].mxu0 }
 0x102   : > { %v546_v59 = vadd.f32 %v1456_v27, %v545_v58  ;;  %v1074_v60 = vpop.f32.mrb[10].mxu0 }
 0x103   : > { %v557_v61 = vadd.f32 %v1074_v60, %v1456_v27  ;;  %v548_v62 = vpop.f32.mrb[11].mxu0  ;;  %v650_v0 = vmax.f32 %v554_v57, 0.0 }
 0x104   : > { %v549_v63 = vadd.f32 %v1456_v27, %v548_v62  ;;  %v648_v2 = vmax.f32 %v546_v59, 0.0 }
 0x105   : > { %v651_v1 = vmax.f32 %v557_v61, 0.0 }
 0x106   : > { %v649_v3 = vmax.f32 %v549_v63, 0.0 }
 0x107   : > { %v1478_v4 = vpack.c.bf16 %v651_v1, %v650_v0 }
 0x108   : > { %v1480_v5 = vpack.c.bf16 %v649_v3, %v648_v2  ;;  %v1077_v6 = vpop.f32.mrb[12].mxu0 }
 0x109   : > { %v570_v7 = vadd.f32 %v1077_v6, %v1456_v27  ;;  %v561_v8 = vpop.f32.mrb[13].mxu0 }
 0x10a   : > { %v562_v9 = vadd.f32 %v1456_v27, %v561_v8  ;;  %v1078_v10 = vpop.f32.mrb[14].mxu0 }
 0x10b   : > { %v573_v11 = vadd.f32 %v1078_v10, %v1456_v27  ;;  %v564_v12 = vpop.f32.mrb[15].mxu0  ;;  %v654_v14 = vmax.f32 %v570_v7, 0.0 }
 0x10c   : > { %v565_v13 = vadd.f32 %v1456_v27, %v564_v12  ;;  %v652_v16 = vmax.f32 %v562_v9, 0.0 }
 0x10d   : > { %v655_v15 = vmax.f32 %v573_v11, 0.0 }
 0x10e   : > { %v653_v17 = vmax.f32 %v565_v13, 0.0 }
 0x10f   : > { %v1486_v18 = vpack.c.bf16 %v655_v15, %v654_v14 }
 0x110   : > { %v1488_v19 = vpack.c.bf16 %v653_v17, %v652_v16  ;;  %v1081_v20 = vpop.f32.mrb[16].mxu0  ;;  %v756_v16 = vld [vmem:[%s1612_s3] sm:$0xff]  ;;  %v1307_v17 = vmov 0.0|0.0  }
 0x111   : > { %v586_v21 = vadd.f32 %v1081_v20, %v1456_v27  ;;  %v577_v22 = vpop.f32.mrb[17].mxu0 }
 0x112   : > { %v578_v23 = vadd.f32 %v1456_v27, %v577_v22  ;;  %v1082_v24 = vpop.f32.mrb[18].mxu0 }
 0x113   : > { %v589_v25 = vadd.f32 %v1082_v24, %v1456_v27  ;;  %v580_v28 = vpop.f32.mrb[19].mxu0  ;;  %v658_v30 = vmax.f32 %v586_v21, 0.0 }
 0x114   : > { %v581_v29 = vadd.f32 %v1456_v27, %v580_v28  ;;  %v656_v32 = vmax.f32 %v578_v23, 0.0 }
 0x115   : > { %v659_v31 = vmax.f32 %v589_v25, 0.0 }
 0x116   : > { %v657_v33 = vmax.f32 %v581_v29, 0.0 }
 0x117   : > { %v1110_v34 = vpack.c.bf16 %v659_v31, %v658_v30 }
 0x118   : > { %v1085_v35 = vpop.f32.mrb[20].mxu0  ;;  %v1106_v36 = vpack.c.bf16 %v657_v33, %v656_v32 }
 0x119   : > { %v602_v37 = vadd.f32 %v1085_v35, %v1456_v27  ;;  %v593_v38 = vpop.f32.mrb[21].mxu0 }
 0x11a   : > { %v594_v39 = vadd.f32 %v1456_v27, %v593_v38  ;;  %v1086_v41 = vpop.f32.mrb[22].mxu0  ;;  %1107 = vmatprep.subr.bf16.mxu1 %v1106_v36 }
 0x11b   : > { %v605_v43 = vadd.f32 %v1086_v41, %v1456_v27  ;;  %v596_v44 = vpop.f32.mrb[23].mxu0  ;;  %1109 = vmatpush3.bf16.msra.mxu1 %v1464_v42  ;;  %v662_v46 = vmax.f32 %v602_v37, 0.0 }
 0x11c   : > { %v597_v45 = vadd.f32 %v1456_v27, %v596_v44  ;;  %1111 = vmatprep.subr.bf16.mxu1 %v1110_v34  ;;  %v660_v48 = vmax.f32 %v594_v39, 0.0 }
 0x11d   : > { %v663_v47 = vmax.f32 %v605_v43, 0.0 }
 0x11e   : > { %v661_v49 = vmax.f32 %v597_v45, 0.0 }
 0x11f   : > { %v1118_v50 = vpack.c.bf16 %v663_v47, %v662_v46  ;;  %1113 = vmatpush3.bf16.msra.mxu1 %v1462_v40 }
 0x120   : > { %v1114_v51 = vpack.c.bf16 %v661_v49, %v660_v48  ;;  %v1089_v52 = vpop.f32.mrb[24].mxu0 }
 0x121   : > { %v618_v53 = vadd.f32 %v1089_v52, %v1456_v27  ;;  %v609_v56 = vpop.f32.mrb[25].mxu0 }
 0x122   : > { %v610_v57 = vadd.f32 %v1456_v27, %v609_v56  ;;  %v1090_v58 = vpop.f32.mrb[26].mxu0  ;;  %1115 = vmatprep.subr.bf16.mxu1 %v1114_v51 }
 0x123   : > { %v621_v42 = vadd.f32 %v1090_v58, %v1456_v27  ;;  %v612_v59 = vpop.f32.mrb[27].mxu0  ;;  %1117 = vmatpush3.bf16.msra.mxu1 %v1472_v55  ;;  %v666_v61 = vmax.f32 %v618_v53, 0.0 }
 0x124   : > { %v613_v60 = vadd.f32 %v1456_v27, %v612_v59  ;;  %1119 = vmatprep.subr.bf16.mxu1 %v1118_v50  ;;  %v664_v40 = vmax.f32 %v610_v57, 0.0 }
 0x125   : > { %v667_v62 = vmax.f32 %v621_v42, 0.0 }
 0x126   : > { %v665_v63 = vmax.f32 %v613_v60, 0.0 }
 0x127   : > { %v1126_v0 = vpack.c.bf16 %v667_v62, %v666_v61  ;;  %1121 = vmatpush3.bf16.msra.mxu1 %v1470_v54 }
 0x128   : > { %v1122_v1 = vpack.c.bf16 %v665_v63, %v664_v40  ;;  %v1093_v2 = vpop.f32.mrb[28].mxu0 }
 0x129   : > { %v634_v3 = vadd.f32 %v1093_v2, %v1456_v27  ;;  %v625_v6 = vpop.f32.mrb[29].mxu0 }
 0x12a   : > { %v626_v7 = vadd.f32 %v1456_v27, %v625_v6  ;;  %v1094_v8 = vpop.f32.mrb[30].mxu0  ;;  %1123 = vmatprep.subr.bf16.mxu1 %v1122_v1 }
 0x12b   : > { %v637_v55 = vadd.f32 %v1094_v8, %v1456_v27  ;;  %v628_v9 = vpop.f32.mrb[31].mxu0  ;;  %1125 = vmatpush3.bf16.msra.mxu1 %v1480_v5  ;;  %v670_v11 = vmax.f32 %v634_v3, 0.0 }
 0x12c   : > { %v629_v10 = vadd.f32 %v1456_v27, %v628_v9  ;;  %1127 = vmatprep.subr.bf16.mxu1 %v1126_v0  ;;  %v668_v54 = vmax.f32 %v626_v7, 0.0  ;;  %v757_v27 = vld [vmem:[%s1612_s3 + $0x8] sm:$0xff] }
 0x12d   : > { %v671_v12 = vmax.f32 %v637_v55, 0.0  ;;  %v1139_v5 = vpack.c.bf16 %v757_v27, %v756_v16 }
 0x12e   : > { %v669_v13 = vmax.f32 %v629_v10, 0.0 }
 0x12f   : > { %v1134_v14 = vpack.c.bf16 %v671_v12, %v670_v11  ;;  %1129 = vmatpush3.bf16.msra.mxu1 %v1478_v4  ;;  %v758_v4 = vld [vmem:[%s1612_s3 + $0x10] sm:$0xff] }
 0x130   : > { %v1130_v15 = vpack.c.bf16 %v669_v13, %v668_v54 }
 0x132   : > { %1131 = vmatprep.subr.bf16.mxu1 %v1130_v15 }
 0x133   : > { %1133 = vmatpush3.bf16.msra.mxu1 %v1488_v19  ;;  %v759_v19 = vld [vmem:[%s1612_s3 + $0x18] sm:$0xff] }
 0x134   : > { %1135 = vmatprep.subr.bf16.mxu1 %v1134_v14  ;;  %v1142_v20 = vpack.c.bf16 %v759_v19, %v758_v4 }
 0x137   : > { %1137 = vmatpush3.bf16.msra.mxu1 %v1486_v18  ;;  %v1309_v18 = vmov 0.0  }
 0x138   : > { %1138 = vmatprep.subr.bf16.mxu1 %v1307_v17 }
 0x13a   : > { %749 = vmatmul.mubr.f32.vlgmr.msra.gmra.mrb[0].mxu1 %v1451_v26 }
 0x13b   : > { %1140 = vmatpush3.bf16.msra.mxu1 %v1139_v5  ;;  %1103 = vmatprep.mubr.msk.f32.mxu1 %vm1308_vm2, %v1309_v18 }
 0x13c   : > { %1141 = vmatprep.subr.bf16.mxu1 %v1307_v17 }
 0x13f   : > { %1143 = vmatpush3.bf16.msra.mxu1 %v1142_v20 }
 0x20d   : > { %v1049_v26 = vpop.f32.mrb[0].mxu1 }
 0x20e   : > { %v1050_v21 = vpop.f32.mrb[1].mxu1 }
 0x20f   : > { %v1051_v22 = vadd.f32 %v1050_v21, %v1049_v26 }
 0x211   : > { %1104 = vmatmul.mubr.msk.f32.vlgmr.msra.gmra.mrb[2].mxu1 %vm761_vm3, %v1051_v22  ;;  %755 = vst.msk [vmem:[%s274_s23] sm:$0x1] %vm754_vm4, %v1051_v22 }
 0x212   : > { %1224 = shalt.err (!%p1221_p3)
}
 0x213   : > { %s1225_s20 = scalar_lea.hbm %s1537_s13, 16  ;;  %s1229_s8 = scalar_lea.hbm %s1615_s6, 32 }
 0x214   : > { %p1226_p4 = scmp.ne.s32.totalorder %s1537_s13, %s1225_s20  ;;  %p1230_p9 = scmp.lt.u32.totalorder %s1537_s13, %s1615_s6 }
 0x215   : > { %p1231_p10 = scmp.lt.u32.totalorder %s1229_s8, %s1225_s20  ;;  %p1233_p12 = scmp.lt.u32.totalorder %s1225_s20, %s1537_s13 }
 0x216   : > { %p1227_p7 = pnand %p1226_p4, %p1390_p5 }
 0x217   : > { %p1232_p11 = por %p1231_p10, %p1230_p9 }
 0x218   : > { %p1228_p8 = pneg %p1227_p7 }
 0x219   : > { %p1234_p13 = por %p1233_p12, %p1232_p11 }
 0x21b   : > { %p1235_p0 = pnand %p1234_p13, %p1228_p8 }
 0x21d   : > { %1238 = shalt.err (!%p1235_p0)
}
 0x21e   : > { %1145 = dma.vmem_to_hbm [thread:$0]  (%p1390_p5), %s855_s14, 16, %s1537_s13, %s838_s15   ;;  %v760_v23 = vld [vmem:[%s1613_s4] sm:$0x1]  ;;  %vm835_vm5 = vcmask 65536  }
 0x21f   : > { %s280_s19 = scalar_lea.vmem [#allocation4], %s1528_s22  ;;  %s1566_s8 = scalar_lea.hbm %s1616_s7, %s993_s29 }
 0x220   : > { %s867_s21 = sshll.u32 %s280_s19, 4  ;;  %s842_s13 = scalar_lea.sflag [#allocation5], %s1528_s22  ;;  %s1568_s21 = int_to_ptr.vmem [resolvable:$true] %s867_s21 }
 0x221   : > { %s1239_s14 = scalar_lea.vmem %s1568_s21, 16  ;;  %s1311_s15 = smov [#allocation4]  }
 0x222   : > { %p1240_p1 = scmp.ne.s32.totalorder %s1568_s21, %s1239_s14  ;;  %s1243_s9 = sshll.u32 %s1311_s15, 4  ;;  %s1244_s9 = int_to_ptr.vmem [resolvable:$false] %s1243_s9 }
 0x223   : > { %s1245_s28 = scalar_lea.vmem %s1244_s9, 32  ;;  %p1246_p4 = scmp.lt.s32.totalorder %s1568_s21, %s1244_s9 }
 0x224   : > { %p1241_p2 = pnand %p1240_p1, %p1390_p5  ;;  %p1247_p7 = scmp.lt.s32.totalorder %s1245_s28, %s1239_s14 }
 0x226   : > { %p1242_p3 = pneg %p1241_p2  ;;  %p1248_p8 = por %p1247_p7, %p1246_p4 }
 0x228   : > { %p1249_p9 = pnand %p1248_p8, %p1242_p3 }
 0x2e4   : > { %v831_v24 = vpop.f32.mrb[2].mxu1 }
 0x2e5   : > { %v832_v25 = vadd.f32 %v831_v24, %v760_v23  ;;  %v1105_v28 = vpop.f32.mrb[3].mxu1 }
 0x2e7   : > { %836 = vst.msk [vmem:[%s280_s19] sm:$0x1] %vm835_vm5, %v832_v25 }
 0x2e8   : > { %1252 = shalt.err (!%p1249_p9)
}
 0x2e9   : > { %s1253_s22 = scalar_lea.hbm %s1566_s8, 16  ;;  %s1257_s16 = scalar_lea.hbm %s1616_s7, 32 }
 0x2ea   : > { %p1254_p10 = scmp.ne.s32.totalorder %s1566_s8, %s1253_s22  ;;  %p1258_p13 = scmp.lt.u32.totalorder %s1566_s8, %s1616_s7 }
 0x2eb   : > { %p1259_p0 = scmp.lt.u32.totalorder %s1257_s16, %s1253_s22  ;;  %p1261_p2 = scmp.lt.u32.totalorder %s1253_s22, %s1566_s8 }
 0x2ec   : > { %p1255_p11 = pnand %p1254_p10, %p1390_p5 }
 0x2ed   : > { %p1260_p1 = por %p1259_p0, %p1258_p13 }
 0x2ee   : > { %p1256_p12 = pneg %p1255_p11 }
 0x2ef   : > { %p1262_p3 = por %p1261_p2, %p1260_p1 }
 0x2f1   : > { %p1263_p4 = pnand %p1262_p3, %p1256_p12 }
 0x2f3   : > { %1266 = shalt.err (!%p1263_p4)
}
 0x2f4   : > { %1146 = dma.vmem_to_hbm [thread:$0]  (%p1390_p5), %s1568_s21, 16, %s1566_s8, %s842_s13  }
 0x2f5 PF: > { %p1156_p7 = scmp.ge.s32.totalorder %s1305_s27, 2  ;;  %s879_s20 = sand.u32 1, %s1293_s24  }
 0x2f6   : > { %s880_s23 = scalar_lea.sflag [#allocation3], %s879_s20 }
 0x2f7   : > { %p1150_p8 = pnand %p1156_p7, %p1394_p6 }
 0x2f9   : > { %1284 = dma.done.wait (!%p1150_p8), %s880_s23, 16  }
 0x2fa   : > { %1286 = vsyncadd (!%p1150_p8), %s880_s23, 4294967280  ;;  %s888_s14 = scalar_lea.sflag [#allocation5], %s879_s20 }
 0x2fb   : > { %1288 = dma.done.wait (!%p1150_p8), %s888_s14, 16  }
 0x2fc   : > { %1290 = vsyncadd (!%p1150_p8), %s888_s14, 4294967280  ;;  %p21_p5 = scmp.ge.s32.totalorder %s1377_s30, 4   ;;  %s1619_s24 = smov %s1297_s25 }
 0x2fd   : > { %s1620_s25 = smov %s1301_s26  ;;  %s1621_s26 = smov %s1388_s10 }
 0x2fe   : > { %s1622_s27 = smov %s1377_s30  ;;  %23 = sbr.rel (!%p21_p5) target bundleno = 5 (0x5), region = 96 }
 0x305   :  { %892 = vsyncpa [#allocation3], 1 }
 0x306   :  { %894 = vsyncpa [#allocation3 + $0x1], 1 }
 0x307   :  { %895 = vsyncpa [#allocation5], 1 }
 0x308   :  { %897 = vsyncpa [#allocation5 + $0x1], 1 }

</bundles_post_ra>
